<compile_context>
chip_gen: v6e
topology: v6e:2x2x1
jax: 0.10.0
libtpu: 0.0.40
codegen_flags: <defaults>
</compile_context>

<pallas_src>
import jax
import jax.numpy as jnp
from jax.experimental import pallas as pl
from jax.experimental.pallas import tpu as pltpu


LANE = 128  # TPU lane width


def _round_up(x, m):
    return (x + m - 1) // m * m


def _choose_tile_b(B):
    """Large batch tiles to amortize per-grid-step overhead; >=2 tiles of
    >=512 rows once B >= 1024 so v7x megacore gets both TensorCores busy.
    Never returns a tile larger than B (ragged last blocks are fine)."""
    B = max(int(B), 1)
    if B <= 8:
        return B                       # full-extent block (allowed by (8,128) rule)
    if B < 1024:
        return (B // 8) * 8            # single (possibly ragged) sublane-aligned tile
    if B <= 2048:
        return _round_up((B + 1) // 2, 8)   # exactly 2 tiles, each >= 512 rows
    return 1024                        # many >=1024-row tiles


def mlp_kernel(x_ref, w1_ref, b1_ref, w2_ref, b2_ref, w3_ref, b3_ref, o_ref):
    # x_ref:  (TILE_B, D_in)       f32 (or bf16 if the producer already emits bf16)
    # w1_ref: (D_in, H1_pad)       compute dtype (f32 or bf16)
    # b1_ref: (1, H1_pad)          f32
    # w2_ref: (H1_pad, H2_pad)     compute dtype
    # b2_ref: (1, H2_pad)          f32
    # w3_ref: (1, H2_pad)          f32   (row of the 1-wide output layer)
    # b3_ref: (1,)                 f32, SMEM scalar
    # o_ref:  (TILE_B, 1)          f32, compact output column
    cdt = w1_ref.dtype

    # Layer 1: cast x to the MXU operand dtype in-kernel (free VPU filler);
    # f32 accumulation, bias/ReLU in f32 (v5e-safe: no bf16 VPU there).
    h1 = jnp.dot(x_ref[...].astype(cdt), w1_ref[...],
                 preferred_element_type=jnp.float32) + b1_ref[...]
    h1 = jnp.maximum(h1, 0.0)

    # Layer 2: cast only the dot operand to the MXU compute dtype.
    h2 = jnp.dot(h1.astype(w2_ref.dtype), w2_ref[...],
                 preferred_element_type=jnp.float32) + b2_ref[...]
    h2 = jnp.maximum(h2, 0.0)

    # Layer 3 (out_features=1): VPU multiply + XLU lane reduction instead of a
    # wasteful 1-column MXU matmul; runs on otherwise-idle units.
    out = jnp.sum(h2 * w3_ref[...], axis=-1, keepdims=True) + b3_ref[0]
    o_ref[...] = jnp.maximum(out, 0.0).astype(o_ref.dtype)


def prepare_params(raw_params, compute_dtype=jnp.float32):
    """One-time layout prep: transpose to (in, out), zero-pad *hidden* dims to
    multiples of 128 (padding along any contraction dim must be zeros), cast
    MXU weight operands to `compute_dtype`.  The input feature dim is NOT
    padded — x is read at its natural width."""
    w1, b1, w2, b2, w3, b3 = raw_params
    h1_dim, d_in = w1.shape
    h2_dim = w2.shape[0]

    h1_pad = _round_up(h1_dim, LANE)
    h2_pad = _round_up(h2_dim, LANE)
    # TODO(synk): align H1/H2 to 256 for the bf16 path on v6e/v7x once hidden
    # dims are large enough that the kernel stops being HBM/overhead-bound.

    w1_p = jnp.pad(w1.T, ((0, 0), (0, h1_pad - h1_dim))).astype(compute_dtype)
    w2_p = jnp.pad(w2.T, ((0, h1_pad - h1_dim),
                          (0, h2_pad - h2_dim))).astype(compute_dtype)
    b1_p = jnp.pad(b1, (0, h1_pad - h1_dim)).reshape(1, h1_pad).astype(jnp.float32)
    b2_p = jnp.pad(b2, (0, h2_pad - h2_dim)).reshape(1, h2_pad).astype(jnp.float32)
    # Final 1-wide layer stays f32 (elementwise-reduce, not an MXU op).
    w3_row = jnp.pad(w3.reshape(1, -1),
                     ((0, 0), (0, h2_pad - h2_dim))).astype(jnp.float32)
    b3_s = b3.reshape(1).astype(jnp.float32)
    return (w1_p, b1_p, w2_p, b2_p, w3_row, b3_s)


def _compiler_params(tile_b, d_in, h1_pad, h2_pad, weight_itemsize):
    # Rough per-core VMEM footprint: resident weights + double-buffered x/out
    # blocks (lane-padded layout) + f32 intermediates, with headroom.
    weights = ((d_in * h1_pad + h1_pad * h2_pad) * weight_itemsize
               + (h1_pad + 2 * h2_pad) * 4)
    x_buf = 2 * tile_b * _round_up(d_in, LANE) * 4
    o_buf = 2 * tile_b * LANE * 4      # (tile_b, 1) block pads to a full lane tile
    tmp = 2 * tile_b * (h1_pad + h2_pad) * 4
    est = weights + x_buf + o_buf + tmp

    kwargs = dict(dimension_semantics=("parallel",))
    if est > (16 << 20):   # exceeds v5e's default scoped VMEM -> set explicitly
        kwargs["vmem_limit_bytes"] = min(int(est * 1.25), 64 << 20)
    return pltpu.CompilerParams(**kwargs)


def mlp_forward(x, params):
    """Fused 3-layer MLP forward. x: (B, D_in) float32 (bf16 also accepted).
    params: output of prepare_params()."""
    w1_p, b1_p, w2_p, b2_p, w3_row, b3_s = params
    B, d_in = x.shape
    assert w1_p.shape[0] == d_in, "x feature dim must match prepared w1"
    h1_pad = w1_p.shape[1]
    h2_pad = w2_p.shape[1]
    itemsize = jnp.dtype(w1_p.dtype).itemsize

    tile_b = _choose_tile_b(B)
    grid_b = pl.cdiv(B, tile_b)

    flops = 2 * B * (d_in * h1_pad + h1_pad * h2_pad + h2_pad)
    bytes_accessed = (
        B * d_in * x.dtype.itemsize                      # x read
        + B * 4                                          # compact output write
        + (d_in * h1_pad + h1_pad * h2_pad) * itemsize   # weights
        + (h1_pad + 2 * h2_pad + 1) * 4                  # biases + w3 row + b3
    )

    out = pl.pallas_call(
        mlp_kernel,
        out_shape=jax.ShapeDtypeStruct((B, 1), jnp.float32),
        grid_spec=pl.GridSpec(
            grid=(grid_b,),
            in_specs=[
                # x: streamed per batch tile at its natural feature width.
                pl.BlockSpec((tile_b, d_in), lambda i: (i, 0)),
                # Weights / biases: same block every tile -> VMEM resident.
                pl.BlockSpec((d_in, h1_pad), lambda i: (0, 0)),
                pl.BlockSpec((1, h1_pad), lambda i: (0, 0)),
                pl.BlockSpec((h1_pad, h2_pad), lambda i: (0, 0)),
                pl.BlockSpec((1, h2_pad), lambda i: (0, 0)),
                pl.BlockSpec((1, h2_pad), lambda i: (0, 0)),
                # Scalar output bias lives in SMEM.
                pl.BlockSpec(memory_space=pltpu.MemorySpace.SMEM),
            ],
            # Compact output column: 128x less HBM writeback than a lane slab.
            out_specs=pl.BlockSpec((tile_b, 1), lambda i: (i, 0)),
        ),
        compiler_params=_compiler_params(tile_b, d_in, h1_pad, h2_pad, itemsize),
        cost_estimate=pl.CostEstimate(
            flops=flops, transcendentals=0, bytes_accessed=bytes_accessed),
    )(x, w1_p, b1_p, w2_p, b2_p, w3_row, b3_s)

    return out


def init_params(key, input_dim, hidden1_dim, hidden2_dim):
    """Deterministic init mimicking nn.Linear's U(-1/sqrt(fan_in), 1/sqrt(fan_in)).
    Stored PyTorch-style: W (out, in), b (out,)."""
    ks = jax.random.split(key, 6)

    def linear_init(kw, kb, out_dim, in_dim):
        bound = 1.0 / jnp.sqrt(in_dim)
        w = jax.random.uniform(kw, (out_dim, in_dim), jnp.float32, -bound, bound)
        b = jax.random.uniform(kb, (out_dim,), jnp.float32, -bound, bound)
        return w, b

    w1, b1 = linear_init(ks[0], ks[1], hidden1_dim, input_dim)
    w2, b2 = linear_init(ks[2], ks[3], hidden2_dim, hidden1_dim)
    w3, b3 = linear_init(ks[4], ks[5], 1, hidden2_dim)
    return (w1, b1, w2, b2, w3, b3)


if __name__ == "__main__":
    key = jax.random.PRNGKey(0)
    k_p, k_x, k_x2, k_x3 = jax.random.split(key, 4)

    input_dim, hidden1_dim, hidden2_dim = 16, 32, 32
    raw = init_params(k_p, input_dim, hidden1_dim, hidden2_dim)
    w1, b1, w2, b2, w3, b3 = raw

    def reference(xv):
        h1r = jnp.maximum(xv @ w1.T + b1, 0.0)
        h2r = jnp.maximum(h1r @ w2.T + b2, 0.0)
        return jnp.maximum(h2r @ w3.T + b3, 0.0)

    params_f32 = prepare_params(raw, compute_dtype=jnp.float32)
    params_bf16 = prepare_params(raw, compute_dtype=jnp.bfloat16)

    # Small batch (single tile), exact f32 path.
    x = jax.random.normal(k_x, (8, input_dim), dtype=jnp.float32)
    y = jax.block_until_ready(mlp_forward(x, params_f32))
    assert y.shape == (8, 1)
    assert jnp.allclose(y, reference(x), atol=1e-5, rtol=1e-5)

    # Ragged batch (not a multiple of 8/tile) -> exercises partial last block.
    x2 = jax.random.normal(k_x2, (300, input_dim), dtype=jnp.float32)
    y2 = jax.block_until_ready(mlp_forward(x2, params_f32))
    assert y2.shape == (300, 1)
    assert jnp.allclose(y2, reference(x2), atol=1e-5, rtol=1e-5)

    # Multi-tile batch (>= 2 grid steps; last tile partial).
    x3 = jax.random.normal(k_x3, (2500, input_dim), dtype=jnp.float32)
    y3 = jax.block_until_ready(mlp_forward(x3, params_f32))
    assert y3.shape == (2500, 1)
    assert jnp.allclose(y3, reference(x3), atol=1e-5, rtol=1e-5)

    # bf16 MXU-operand path (x cast in-kernel; f32 accumulation), loose tol.
    # TODO(synk): fp8 MXU operands for very large batch on v7x not implemented.
    yb = jax.block_until_ready(mlp_forward(x, params_bf16))
    assert yb.shape == (8, 1)
    assert jnp.allclose(yb, reference(x), atol=5e-2, rtol=5e-2)

    print("KERNEL_OK")
</pallas_src>

<mosaic_0001>
module attributes {stable_mosaic.version = 11 : i64} {
  func.func @mlp_kernel(%arg0: i32, %arg1: memref<8x16xf32, #tpu.memory_space<vmem>>, %arg2: memref<16x128xf32, #tpu.memory_space<vmem>>, %arg3: memref<1x128xf32, #tpu.memory_space<vmem>>, %arg4: memref<128x128xf32, #tpu.memory_space<vmem>>, %arg5: memref<1x128xf32, #tpu.memory_space<vmem>>, %arg6: memref<1x128xf32, #tpu.memory_space<vmem>>, %arg7: memref<1xf32, #tpu.memory_space<smem>>, %arg8: memref<8x1xf32, #tpu.memory_space<vmem>>) attributes {dimension_semantics = [#tpu.dimension_semantics<parallel>], iteration_bounds = array<i64: 1>, scalar_prefetch = 0 : i64, scratch_operands = 0 : i64, tpu.core_type = #tpu.core_type<tc>, window_params = [{transform_indices = @transform_0, window_bounds = array<i64: 8, 16>}, {pipeline_mode = #tpu.pipeline_mode<synchronous>, transform_indices = @transform_1, window_bounds = array<i64: 16, 128>}, {pipeline_mode = #tpu.pipeline_mode<synchronous>, transform_indices = @transform_2, window_bounds = array<i64: 1, 128>}, {pipeline_mode = #tpu.pipeline_mode<synchronous>, transform_indices = @transform_3, window_bounds = array<i64: 128, 128>}, {pipeline_mode = #tpu.pipeline_mode<synchronous>, transform_indices = @transform_4, window_bounds = array<i64: 1, 128>}, {pipeline_mode = #tpu.pipeline_mode<synchronous>, transform_indices = @transform_5, window_bounds = array<i64: 1, 128>}, {transform_indices = @transform_6, window_bounds = array<i64: 1>}, {transform_indices = @transform_7, window_bounds = array<i64: 8, 1>}]} {
    %c0 = arith.constant 0 : index
    %c0_0 = arith.constant 0 : index
    %0 = vector.load %arg1[%c0, %c0_0] : memref<8x16xf32, #tpu.memory_space<vmem>>, vector<8x16xf32>
    %c0_1 = arith.constant 0 : index
    %c0_2 = arith.constant 0 : index
    %1 = vector.load %arg2[%c0_1, %c0_2] : memref<16x128xf32, #tpu.memory_space<vmem>>, vector<16x128xf32>
    %cst = arith.constant dense<0.000000e+00> : vector<8x128xf32>
    %2 = tpu.matmul %0, %1, %cst {dimension_numbers = #tpu.dot_dimension_numbers<[1], [0], [0], [1], [0, 0, 1, 1], [], []>} : vector<8x16xf32>, vector<16x128xf32>, vector<8x128xf32> -> vector<8x128xf32>
    %c0_3 = arith.constant 0 : index
    %c0_4 = arith.constant 0 : index
    %3 = vector.load %arg3[%c0_3, %c0_4] : memref<1x128xf32, #tpu.memory_space<vmem>>, vector<1x128xf32>
    %4 = vector.broadcast %3 : vector<1x128xf32> to vector<8x128xf32>
    %5 = arith.addf %2, %4 : vector<8x128xf32>
    %cst_5 = arith.constant 0.000000e+00 : f32
    %6 = vector.broadcast %cst_5 : f32 to vector<8x128xf32>
    %7 = arith.maximumf %5, %6 : vector<8x128xf32>
    %c0_6 = arith.constant 0 : index
    %c0_7 = arith.constant 0 : index
    %8 = vector.load %arg4[%c0_6, %c0_7] : memref<128x128xf32, #tpu.memory_space<vmem>>, vector<128x128xf32>
    %cst_8 = arith.constant dense<0.000000e+00> : vector<8x128xf32>
    %9 = tpu.matmul %7, %8, %cst_8 {dimension_numbers = #tpu.dot_dimension_numbers<[1], [0], [0], [1], [0, 0, 1, 1], [], []>} : vector<8x128xf32>, vector<128x128xf32>, vector<8x128xf32> -> vector<8x128xf32>
    %c0_9 = arith.constant 0 : index
    %c0_10 = arith.constant 0 : index
    %10 = vector.load %arg5[%c0_9, %c0_10] : memref<1x128xf32, #tpu.memory_space<vmem>>, vector<1x128xf32>
    %11 = vector.broadcast %10 : vector<1x128xf32> to vector<8x128xf32>
    %12 = arith.addf %9, %11 : vector<8x128xf32>
    %cst_11 = arith.constant 0.000000e+00 : f32
    %13 = vector.broadcast %cst_11 : f32 to vector<8x128xf32>
    %14 = arith.maximumf %12, %13 : vector<8x128xf32>
    %c0_12 = arith.constant 0 : index
    %c0_13 = arith.constant 0 : index
    %15 = vector.load %arg6[%c0_12, %c0_13] : memref<1x128xf32, #tpu.memory_space<vmem>>, vector<1x128xf32>
    %16 = vector.broadcast %15 : vector<1x128xf32> to vector<8x128xf32>
    %17 = arith.mulf %14, %16 : vector<8x128xf32>
    %cst_14 = arith.constant dense<0.000000e+00> : vector<8xf32>
    %18 = vector.multi_reduction <add>, %17, %cst_14 [1] : vector<8x128xf32> to vector<8xf32>
    %19 = vector.shape_cast %18 : vector<8xf32> to vector<8x1xf32>
    %c0_15 = arith.constant 0 : index
    %20 = memref.load %arg7[%c0_15] : memref<1xf32, #tpu.memory_space<smem>>
    %21 = vector.broadcast %20 : f32 to vector<8x1xf32>
    %22 = arith.addf %19, %21 : vector<8x1xf32>
    %cst_16 = arith.constant 0.000000e+00 : f32
    %23 = vector.broadcast %cst_16 : f32 to vector<8x1xf32>
    %24 = arith.maximumf %22, %23 : vector<8x1xf32>
    %c0_17 = arith.constant 0 : index
    %c0_18 = arith.constant 0 : index
    %25 = vector.load %arg8[%c0_17, %c0_18] : memref<8x1xf32, #tpu.memory_space<vmem>>, vector<8x1xf32>
    tpu.vector_store %arg8[%c0_17, %c0_18], %24 {strides = array<i32>} : memref<8x1xf32, #tpu.memory_space<vmem>>, vector<8x1xf32>,
    return
  }
  func.func @transform_0(%arg0: i32) -> (i32, i32) {
    %c0_i32 = arith.constant 0 : i32
    %c0_i32_0 = arith.constant 0 : i32
    return %arg0, %c0_i32 : i32, i32
  }
  func.func @transform_1(%arg0: i32) -> (i32, i32) {
    %c0_i32 = arith.constant 0 : i32
    %c0_i32_0 = arith.constant 0 : i32
    %c0_i32_1 = arith.constant 0 : i32
    return %c0_i32, %c0_i32_0 : i32, i32
  }
  func.func @transform_2(%arg0: i32) -> (i32, i32) {
    %c0_i32 = arith.constant 0 : i32
    %c0_i32_0 = arith.constant 0 : i32
    %c0_i32_1 = arith.constant 0 : i32
    return %c0_i32, %c0_i32_0 : i32, i32
  }
  func.func @transform_3(%arg0: i32) -> (i32, i32) {
    %c0_i32 = arith.constant 0 : i32
    %c0_i32_0 = arith.constant 0 : i32
    %c0_i32_1 = arith.constant 0 : i32
    return %c0_i32, %c0_i32_0 : i32, i32
  }
  func.func @transform_4(%arg0: i32) -> (i32, i32) {
    %c0_i32 = arith.constant 0 : i32
    %c0_i32_0 = arith.constant 0 : i32
    %c0_i32_1 = arith.constant 0 : i32
    return %c0_i32, %c0_i32_0 : i32, i32
  }
  func.func @transform_5(%arg0: i32) -> (i32, i32) {
    %c0_i32 = arith.constant 0 : i32
    %c0_i32_0 = arith.constant 0 : i32
    %c0_i32_1 = arith.constant 0 : i32
    return %c0_i32, %c0_i32_0 : i32, i32
  }
  func.func @transform_6(%arg0: i32) -> i32 {
    %c0_i32 = arith.constant 0 : i32
    %c0_i32_0 = arith.constant 0 : i32
    return %c0_i32 : i32
  }
  func.func @transform_7(%arg0: i32) -> (i32, i32) {
    %c0_i32 = arith.constant 0 : i32
    %c0_i32_0 = arith.constant 0 : i32
    return %arg0, %c0_i32 : i32, i32
  }
}

</mosaic_0001>

<bundles_post_ra>
// kernel: tpu_custom_call.1
= control target key start
LH: loop header
LB: loop body
LE: loop exit
PB: predicated region body
PF: predicated region fallthrough
CT: control target
= control target key end

     0   :  { %13 = vsyncpa [#allocation4], 0  ;;  %s475_s0 = inlined_call_operand.hbm [shape: f32[8,16], index: 0, kind: input, shape index: {}]   ;;  %s476_s1 = inlined_call_operand.hbm [shape: f32[16,128], index: 1, kind: input, shape index: {}]   ;;  %s477_s2 = inlined_call_operand.vmem [shape: f32[1,128], index: 2, kind: input, shape index: {}]   ;;  %s478_s3 = inlined_call_operand.hbm [shape: f32[128,128], index: 3, kind: input, shape index: {}]   ;;  %s479_s4 = inlined_call_operand.vmem [shape: f32[1,128], index: 4, kind: input, shape index: {}]   ;;  %s480_s5 = inlined_call_operand.vmem [shape: f32[1,128], index: 5, kind: input, shape index: {}]   ;;  %s481_s6 = inlined_call_operand.<no memory space> [shape: f32[1], index: 6, kind: input, shape index: {}]   ;;  %s482_s7 = inlined_call_operand.vmem [shape: f32[8,1], index: 7, kind: output, shape index: {}]  }
   0x1   :  { %14 = vsyncpa [#allocation6], 0  ;;  %s404_s24 = smov [#allocation5]  }
   0x2   :  { %s30_s25 = sshll.u32 %s404_s24, 4  ;;  %s31_s25 = int_to_ptr.vmem [resolvable:$true] %s30_s25 }
   0x3   :  { %s348_s26 = scalar_lea.vmem %s31_s25, 256  ;;  %p353_p1 = scmp.lt.s32.totalorder %s31_s25, %s31_s25 }
   0x4   :  { %p349_p0 = scmp.ne.s32.totalorder %s31_s25, %s348_s26  ;;  %p354_p2 = scmp.lt.s32.totalorder %s348_s26, %s348_s26 }
   0x6   :  { %p355_p3 = por %p354_p2, %p353_p1 }
   0x8   :  { %p356_p4 = pnand %p355_p3, %p349_p0 }
   0xa   :  { %359 = shalt.err (!%p356_p4)
}
   0xb   :  { %s405_s27 = smov 128   ;;  %s406_s28 = smov 8  }
   0xc   :  { %36 = dma.hbm_to_vmem [thread:$0]  %s476_s1, 256, %s31_s25, [#allocation6], %s405_s27, %s405_s27, %s406_s28  }
   0xd   :  { %s407_s8 = smov [#allocation3]   ;;  %s408_s10 = smov [#allocation7]  }
   0xe   :  { %s21_s9 = sshll.u32 %s407_s8, 4  ;;  %s44_s11 = sshll.u32 %s408_s10, 4  ;;  %s22_s9 = int_to_ptr.vmem [resolvable:$true] %s21_s9  ;;  %s45_s11 = int_to_ptr.vmem [resolvable:$true] %s44_s11 }
   0xf   :  { %s368_s12 = scalar_lea.vmem %s22_s9, 128  ;;  %p373_p6 = scmp.lt.s32.totalorder %s22_s9, %s22_s9 }
  0x10   :  { %p369_p5 = scmp.ne.s32.totalorder %s22_s9, %s368_s12  ;;  %p374_p7 = scmp.lt.s32.totalorder %s368_s12, %s368_s12 }
  0x12   :  { %p375_p8 = por %p374_p7, %p373_p6 }
  0x14   :  { %p376_p9 = pnand %p375_p8, %p369_p5 }
  0x16   :  { %379 = shalt.err (!%p376_p9)
}
  0x17   :  { %24 = dma.hbm_to_vmem [thread:$0]  %s475_s0, 128, %s22_s9, [#allocation4]  }
  0x18   :  { %s388_s15 = scalar_lea.vmem %s45_s11, 2048  ;;  %p393_p11 = scmp.lt.s32.totalorder %s45_s11, %s45_s11 }
  0x19   :  { %p389_p10 = scmp.ne.s32.totalorder %s45_s11, %s388_s15  ;;  %p394_p12 = scmp.lt.s32.totalorder %s388_s15, %s388_s15 }
  0x1b   :  { %p395_p13 = por %p394_p12, %p393_p11 }
  0x1d   :  { %p396_p0 = pnand %p395_p13, %p389_p10 }
  0x1f   :  { %399 = shalt.err (!%p396_p0)
}
  0x20   :  { %50 = dma.hbm_to_vmem [thread:$0]  %s478_s3, 2048, %s45_s11, [#allocation6], %s405_s27, %s405_s27, %s406_s28  }
  0x21   :  { %400 = dma.done.wait [#allocation4], 128  }
  0x22   :  { %401 = vsyncadd [#allocation4], 4294967168 }
  0x23   :  { %402 = dma.done.wait [#allocation6], 2304  }
  0x24   :  { %403 = vsyncadd [#allocation6], 4294964992  ;;  %v409_v0 = vmov 0.0   ;;  %vm410_vm0 = vmmov 0   ;;  %v68_v1 = vld [vmem:[#allocation5 + $0x8] sm:$0xff]  ;;  %v67_v2 = vld [vmem:[#allocation5] sm:$0xff]  ;;  %v256_v32 = vstv %s481_s6 }
  0x25   :  { %291 = vmatprep.subr.mxu0 %v409_v0  ;;  %295 = vmatprep.mubr.msk.f32.mxu0 %vm410_vm0, %v409_v0  ;;  %v66_v3 = vld [vmem:[#allocation3] sm:$0xff]  ;;  %vm76_vm1 = vcmask 130048   ;;  %v166_v4 = vld [vmem:[#allocation7 + $0x78] sm:$0xff]  ;;  %v165_v5 = vld [vmem:[#allocation7 + $0x70] sm:$0xff]  ;;  %vm259_vm2 = vcmask 7168  }
  0x26   :  { %298 = vmatprep.subr.mxu1 %v409_v0  ;;  %330 = vmatprep.mubr.msk.f32.mxu1 %vm410_vm0, %v409_v0  ;;  %v164_v6 = vld [vmem:[#allocation7 + $0x68] sm:$0xff]  ;;  %v163_v7 = vld [vmem:[#allocation7 + $0x60] sm:$0xff]  ;;  %v162_v8 = vld [vmem:[#allocation7 + $0x58] sm:$0xff] }
  0x27   :  { %292 = vmatpush3.msra.mxu0 %v68_v1  ;;  %299 = vmatpush3.msra.mxu1 %v166_v4  ;;  %v161_v9 = vld [vmem:[#allocation7 + $0x50] sm:$0xff]  ;;  %v160_v10 = vld [vmem:[#allocation7 + $0x48] sm:$0xff]  ;;  %v159_v11 = vld [vmem:[#allocation7 + $0x40] sm:$0xff] }
  0x28   :  { %293 = vmatprep.subr.mxu0 %v409_v0  ;;  %300 = vmatprep.subr.mxu1 %v409_v0  ;;  %v158_v12 = vld [vmem:[#allocation7 + $0x38] sm:$0xff]  ;;  %v157_v13 = vld [vmem:[#allocation7 + $0x30] sm:$0xff]  ;;  %v156_v14 = vld [vmem:[#allocation7 + $0x28] sm:$0xff] }
  0x29   :  { %294 = vmatpush3.msra.mxu0 %v67_v2  ;;  %301 = vmatpush3.msra.mxu1 %v165_v5  ;;  %v155_v15 = vld [vmem:[#allocation7 + $0x20] sm:$0xff]  ;;  %v154_v16 = vld [vmem:[#allocation7 + $0x18] sm:$0xff]  ;;  %v153_v17 = vld [vmem:[#allocation7 + $0x10] sm:$0xff] }
  0x2a   :  { %296 = vmatmul.mubr.msk.f32.vlgmr.msra.gmra.mxu0 %vm76_vm1, %v66_v3  ;;  %302 = vmatprep.subr.mxu1 %v409_v0  ;;  %v152_v18 = vld [vmem:[#allocation7 + $0x8] sm:$0xff]  ;;  %v151_v19 = vld [vmem:[#allocation7] sm:$0xff] }
  0x2b   :  { %303 = vmatpush3.msra.mxu1 %v164_v6  ;;  %v267_v20 = vld [vmem:[%s477_s2] ss:$0 sm:$0xff] }
  0x2c   :  { %304 = vmatprep.subr.mxu1 %v409_v0  ;;  %v269_v25 = vld [vmem:[%s479_s4] ss:$0 sm:$0xff] }
  0x2d   :  { %305 = vmatpush3.msra.mxu1 %v163_v7  ;;  %v270_v29 = vld [vmem:[%s480_s5] ss:$0 sm:$0xff] }
  0x2e   :  { %306 = vmatprep.subr.mxu1 %v409_v0 }
  0x2f   :  { %307 = vmatpush3.msra.mxu1 %v162_v8 }
  0x30   :  { %308 = vmatprep.subr.mxu1 %v409_v0 }
  0x31   :  { %309 = vmatpush3.msra.mxu1 %v161_v9 }
  0x32   :  { %310 = vmatprep.subr.mxu1 %v409_v0 }
  0x33   :  { %311 = vmatpush3.msra.mxu1 %v160_v10 }
  0x34   :  { %312 = vmatprep.subr.mxu1 %v409_v0 }
  0x35   :  { %313 = vmatpush3.msra.mxu1 %v159_v11 }
  0x36   :  { %314 = vmatprep.subr.mxu1 %v409_v0 }
  0x37   :  { %315 = vmatpush3.msra.mxu1 %v158_v12 }
  0x38   :  { %316 = vmatprep.subr.mxu1 %v409_v0 }
  0x39   :  { %317 = vmatpush3.msra.mxu1 %v157_v13 }
  0x3a   :  { %318 = vmatprep.subr.mxu1 %v409_v0 }
  0x3b   :  { %319 = vmatpush3.msra.mxu1 %v156_v14 }
  0x3c   :  { %320 = vmatprep.subr.mxu1 %v409_v0 }
  0x3d   :  { %321 = vmatpush3.msra.mxu1 %v155_v15 }
  0x3e   :  { %322 = vmatprep.subr.mxu1 %v409_v0 }
  0x3f   :  { %323 = vmatpush3.msra.mxu1 %v154_v16 }
  0x40   :  { %324 = vmatprep.subr.mxu1 %v409_v0 }
  0x41   :  { %325 = vmatpush3.msra.mxu1 %v153_v17 }
  0x42   :  { %326 = vmatprep.subr.mxu1 %v409_v0 }
  0x43   :  { %327 = vmatpush3.msra.mxu1 %v152_v18 }
  0x44   :  { %328 = vmatprep.subr.mxu1 %v409_v0 }
  0x45   :  { %329 = vmatpush3.msra.mxu1 %v151_v19 }
  0xea   :  { %v146_v21 = vpop.f32.mrf.mxu0 }
  0xeb   :  { %v147_v22 = vadd.f32 %v267_v20, %v146_v21 }
  0xec   :  { %v297_v23 = vpop.f32.mrf.mxu0 }
  0xed   :  { %v150_v24 = vmax.f32 %v147_v22, 0.0 }
  0xef   :  { %331 = vmatmul.mubr.f32.vlgmr.msra.gmra.mxu1 %v150_v24 }
 0x1af   :  { %v240_v26 = vpop.f32.mrf.mxu1 }
 0x1b0   :  { %v241_v27 = vadd.f32 %v269_v25, %v240_v26 }
 0x1b1   :  { %v332_v28 = vpop.f32.mrf.mxu1 }
 0x1b2   :  { %v244_v30 = vmax.f32 %v241_v27, 0.0 }
 0x1b4   :  { %v252_v31 = vmul.f32 %v270_v29, %v244_v30 }
 0x1b6   :  { %253 = vadd.xlane.f32.xlu0 %v252_v31 }
 0x23f   :  { %v254_v33 = vpop.xlane.xlu0 %253 }
 0x240   :  { %v257_v34 = vadd.f32 %v256_v32, %v254_v33 }
 0x242   :  { %v258_v35 = vmax.f32 %v257_v34, 0.0 }
 0x244   :  { %260 = vst.msk [vmem:[%s482_s7] sm:$0xff] %vm259_vm2, %v258_v35 }
 0x245   :  { %265 = vsyncpa [#allocation4], 1 }
 0x246   :  { %266 = vsyncpa [#allocation6], 1 }

</bundles_post_ra>
